<compile_context>
chip_gen: v6e
topology: v6e:2x2x1
jax: 0.10.0
libtpu: 0.0.40
codegen_flags: <defaults>
</compile_context>

<pallas_src>
import functools

import jax
import jax.numpy as jnp
import numpy as np
from jax.experimental import pallas as pl
from jax.experimental.pallas import tpu as pltpu


def _layernorm(x, eps=1e-6):
    # No-affine LayerNorm over the last dim; compute (x - mu) once.
    mu = jnp.mean(x, axis=-1, keepdims=True)
    d = x - mu
    var = jnp.mean(d * d, axis=-1, keepdims=True)
    return d * jax.lax.rsqrt(var + eps)


def adaln_block_kernel(num_heads,
                       x_ref, ada_ref,
                       wq_ref, bq_ref, wk_ref, bk_ref, wv_ref, bv_ref,
                       wp_ref, bp_ref,
                       w1_ref, b1_ref, w2_ref, b2_ref,
                       o_ref):
    H = x_ref.shape[-1]
    hd = H // num_heads
    att_scale = hd ** -0.5

    xb = x_ref[0]                                              # (T, H)

    # Static ref slices of the packed modulation tensor (zero runtime cost).
    shift_msa = ada_ref[0, 0]                                  # (H,)
    scale_msa = ada_ref[0, 1]
    gate_msa = ada_ref[0, 2]
    shift_mlp = ada_ref[0, 3]
    scale_mlp = ada_ref[0, 4]
    gate_mlp = ada_ref[0, 5]

    # ---- attention branch: LN1 -> modulate -> MHA -> proj -> gated residual
    xm = _layernorm(xb) * (1.0 + scale_msa) + shift_msa
    q = jnp.dot(xm, wq_ref[...], preferred_element_type=jnp.float32) + bq_ref[...]
    k = jnp.dot(xm, wk_ref[...], preferred_element_type=jnp.float32) + bk_ref[...]
    v = jnp.dot(xm, wv_ref[...], preferred_element_type=jnp.float32) + bv_ref[...]

    heads = []
    for h in range(num_heads):                                 # static unroll
        sl = slice(h * hd, (h + 1) * hd)
        qh, kh, vh = q[:, sl], k[:, sl], v[:, sl]              # (T, hd)
        # q @ k^T without materialising a transpose
        s = jax.lax.dot_general(qh, kh, (((1,), (1,)), ((), ())),
                                preferred_element_type=jnp.float32) * att_scale
        s = s - jnp.max(s, axis=-1, keepdims=True)             # stable softmax
        p = jnp.exp(s)
        p = p * pl.reciprocal(jnp.sum(p, axis=-1, keepdims=True), approx=False)
        heads.append(jnp.dot(p, vh, preferred_element_type=jnp.float32))
    attn = jnp.concatenate(heads, axis=-1)                     # (T, H)
    attn = jnp.dot(attn, wp_ref[...],
                   preferred_element_type=jnp.float32) + bp_ref[...]
    y = xb + gate_msa * attn                                   # residual 1

    # ---- MLP branch: LN2 -> modulate -> fc1 -> gelu(tanh) -> fc2 -> gated residual
    ym = _layernorm(y) * (1.0 + scale_mlp) + shift_mlp
    hmid = jnp.dot(ym, w1_ref[...],
                   preferred_element_type=jnp.float32) + b1_ref[...]
    hmid = jax.nn.gelu(hmid, approximate=True)                 # GELU(tanh)
    mlp = jnp.dot(hmid, w2_ref[...],
                  preferred_element_type=jnp.float32) + b2_ref[...]

    o_ref[0] = (y + gate_mlp * mlp).astype(o_ref.dtype)


def adaln_transformer_block(x, c, params, *, num_heads):
    B, T, H = x.shape
    assert H % num_heads == 0

    # ---- conditioning path hoisted out of the kernel: ONE batched matmul ----
    c_m = jnp.mean(c, axis=1)                                  # (B, H)
    c_act = c_m * jax.nn.sigmoid(c_m)                          # SiLU
    ada = c_act @ params["w_ada"] + params["b_ada"]            # (B, 6H)
    ada = ada.reshape(B, 6, H)                                 # chunk(6, -1) == rows

    # split packed QKV so the kernel never slices a 3H lane axis
    w_q, w_k, w_v = jnp.split(params["w_qkv"], 3, axis=1)
    b_q, b_k, b_v = jnp.split(params["b_qkv"], 3, axis=0)

    # pad MLP hidden dim to a lane-dense multiple of 128 (numerically exact)
    w1, b1, w2 = params["w_fc1"], params["b_fc1"], params["w_fc2"]
    Hm = w1.shape[1]
    Hm_pad = max(128, ((Hm + 127) // 128) * 128)
    if Hm_pad != Hm:
        w1 = jnp.pad(w1, ((0, 0), (0, Hm_pad - Hm)))
        b1 = jnp.pad(b1, ((0, Hm_pad - Hm),))
        w2 = jnp.pad(w2, ((0, Hm_pad - Hm), (0, 0)))

    row = lambda v: v.reshape(1, -1)

    itemsize = jnp.dtype(x.dtype).itemsize
    flops = B * (8 * T * H * H + 4 * T * T * H + 4 * T * H * Hm_pad)
    transc = B * (num_heads * T * T + T * Hm_pad)
    bytes_acc = itemsize * (2 * B * T * H + 6 * B * H + 4 * H * H
                            + 2 * H * Hm_pad + 5 * H + Hm_pad)

    weight_spec = lambda shape: pl.BlockSpec(shape, lambda b: (0, 0))

    kernel = functools.partial(adaln_block_kernel, num_heads)

    # NOTE: (1, T, H) blocks satisfy the (8,128) rule because they span the
    # full (T, H) extent; if T-tiling is added later, tile sizes must be
    # multiples of (8, 128).
    return pl.pallas_call(
        kernel,
        out_shape=jax.ShapeDtypeStruct((B, T, H), x.dtype),
        grid_spec=pltpu.PrefetchScalarGridSpec(
            num_scalar_prefetch=0,
            grid=(B,),
            in_specs=[
                pl.BlockSpec((1, T, H), lambda b: (b, 0, 0)),        # x
                pl.BlockSpec((1, 6, H), lambda b: (b, 0, 0)),        # ada (6 mods)
                weight_spec((H, H)), weight_spec((1, H)),            # w_q, b_q
                weight_spec((H, H)), weight_spec((1, H)),            # w_k, b_k
                weight_spec((H, H)), weight_spec((1, H)),            # w_v, b_v
                weight_spec((H, H)), weight_spec((1, H)),            # w_proj, b_proj
                weight_spec((H, Hm_pad)), weight_spec((1, Hm_pad)),  # w_fc1, b_fc1
                weight_spec((Hm_pad, H)), weight_spec((1, H)),       # w_fc2, b_fc2
            ],
            out_specs=pl.BlockSpec((1, T, H), lambda b: (b, 0, 0)),
        ),
        compiler_params=pltpu.CompilerParams(
            dimension_semantics=("parallel",),
            vmem_limit_bytes=32 * 1024 * 1024,
        ),
        cost_estimate=pl.CostEstimate(flops=flops, transcendentals=transc,
                                      bytes_accessed=bytes_acc),
    )(x, ada,
      w_q, row(b_q), w_k, row(b_k), w_v, row(b_v),
      params["w_proj"], row(params["b_proj"]),
      w1, row(b1), w2, row(params["b_fc2"]))


def reference_forward(x, c, params, num_heads):
    # Pure-JAX mirror of the PyTorch forward (eval mode).
    B, T, H = x.shape
    hd = H // num_heads

    def ln(v):
        mu = jnp.mean(v, -1, keepdims=True)
        var = jnp.mean((v - mu) ** 2, -1, keepdims=True)
        return (v - mu) / jnp.sqrt(var + 1e-6)

    c_m = jnp.mean(c, axis=1)
    ada = (c_m * jax.nn.sigmoid(c_m)) @ params["w_ada"] + params["b_ada"]
    sm, scm, gm, sp, scp, gp = jnp.split(ada, 6, axis=-1)

    h = ln(x) * (1 + scm[:, None, :]) + sm[:, None, :]
    qkv = h @ params["w_qkv"] + params["b_qkv"]
    q, k, v = jnp.split(qkv, 3, axis=-1)
    q = q.reshape(B, T, num_heads, hd).transpose(0, 2, 1, 3)
    k = k.reshape(B, T, num_heads, hd).transpose(0, 2, 1, 3)
    v = v.reshape(B, T, num_heads, hd).transpose(0, 2, 1, 3)
    s = jnp.einsum("bhqd,bhkd->bhqk", q, k) * (hd ** -0.5)
    p = jax.nn.softmax(s, axis=-1)
    o = jnp.einsum("bhqk,bhkd->bhqd", p, v).transpose(0, 2, 1, 3).reshape(B, T, H)
    o = o @ params["w_proj"] + params["b_proj"]
    x = x + gm[:, None, :] * o

    h2 = ln(x) * (1 + scp[:, None, :]) + sp[:, None, :]
    m = jax.nn.gelu(h2 @ params["w_fc1"] + params["b_fc1"], approximate=True)
    m = m @ params["w_fc2"] + params["b_fc2"]
    return x + gp[:, None, :] * m


if __name__ == "__main__":
    B, T, T_cond, H = 2, 8, 4, 32
    num_heads = 4
    mlp_ratio = 0.4
    Hm = int(H * mlp_ratio)

    key = jax.random.PRNGKey(0)
    ks = jax.random.split(key, 12)

    def rnd(k, shape, scale):
        return jax.random.normal(k, shape, dtype=jnp.float32) * scale

    x = rnd(ks[0], (B, T, H), 1.0)
    c = rnd(ks[1], (B, T_cond, H), 1.0)

    # Synthetic parameters, stored transposed to (in, out) for `x @ W`.
    params = {
        "w_ada":  rnd(ks[2], (H, 6 * H), H ** -0.5),
        "b_ada":  rnd(ks[3], (6 * H,), 0.02),
        "w_qkv":  rnd(ks[4], (H, 3 * H), H ** -0.5),
        "b_qkv":  rnd(ks[5], (3 * H,), 0.02),
        "w_proj": rnd(ks[6], (H, H), H ** -0.5),
        "b_proj": rnd(ks[7], (H,), 0.02),
        "w_fc1":  rnd(ks[8], (H, Hm), H ** -0.5),
        "b_fc1":  rnd(ks[9], (Hm,), 0.02),
        "w_fc2":  rnd(ks[10], (Hm, H), Hm ** -0.5),
        "b_fc2":  rnd(ks[11], (H,), 0.02),
    }

    out = adaln_transformer_block(x, c, params, num_heads=num_heads)
    out = jax.block_until_ready(out)

    ref = reference_forward(x, c, params, num_heads)
    np.testing.assert_allclose(np.asarray(out), np.asarray(ref),
                               rtol=1e-4, atol=1e-4)
    print("KERNEL_OK")
</pallas_src>

<mosaic_0001>
module attributes {stable_mosaic.version = 11 : i64} {
  func.func @adaln_block_kernel(%arg0: i32, %arg1: memref<1x8x32xf32, #tpu.memory_space<vmem>>, %arg2: memref<1x6x32xf32, #tpu.memory_space<vmem>>, %arg3: memref<32x32xf32, #tpu.memory_space<vmem>>, %arg4: memref<1x32xf32, #tpu.memory_space<vmem>>, %arg5: memref<32x32xf32, #tpu.memory_space<vmem>>, %arg6: memref<1x32xf32, #tpu.memory_space<vmem>>, %arg7: memref<32x32xf32, #tpu.memory_space<vmem>>, %arg8: memref<1x32xf32, #tpu.memory_space<vmem>>, %arg9: memref<32x32xf32, #tpu.memory_space<vmem>>, %arg10: memref<1x32xf32, #tpu.memory_space<vmem>>, %arg11: memref<32x128xf32, #tpu.memory_space<vmem>>, %arg12: memref<1x128xf32, #tpu.memory_space<vmem>>, %arg13: memref<128x32xf32, #tpu.memory_space<vmem>>, %arg14: memref<1x32xf32, #tpu.memory_space<vmem>>, %arg15: memref<1x8x32xf32, #tpu.memory_space<vmem>>) attributes {dimension_semantics = [#tpu.dimension_semantics<parallel>], iteration_bounds = array<i64: 2>, scalar_prefetch = 0 : i64, scratch_operands = 0 : i64, tpu.core_type = #tpu.core_type<tc>, window_params = [{transform_indices = @transform_0, window_bounds = array<i64: 1, 8, 32>}, {transform_indices = @transform_1, window_bounds = array<i64: 1, 6, 32>}, {pipeline_mode = #tpu.pipeline_mode<synchronous>, transform_indices = @transform_2, window_bounds = array<i64: 32, 32>}, {pipeline_mode = #tpu.pipeline_mode<synchronous>, transform_indices = @transform_3, window_bounds = array<i64: 1, 32>}, {pipeline_mode = #tpu.pipeline_mode<synchronous>, transform_indices = @transform_4, window_bounds = array<i64: 32, 32>}, {pipeline_mode = #tpu.pipeline_mode<synchronous>, transform_indices = @transform_5, window_bounds = array<i64: 1, 32>}, {pipeline_mode = #tpu.pipeline_mode<synchronous>, transform_indices = @transform_6, window_bounds = array<i64: 32, 32>}, {pipeline_mode = #tpu.pipeline_mode<synchronous>, transform_indices = @transform_7, window_bounds = array<i64: 1, 32>}, {pipeline_mode = #tpu.pipeline_mode<synchronous>, transform_indices = @transform_8, window_bounds = array<i64: 32, 32>}, {pipeline_mode = #tpu.pipeline_mode<synchronous>, transform_indices = @transform_9, window_bounds = array<i64: 1, 32>}, {pipeline_mode = #tpu.pipeline_mode<synchronous>, transform_indices = @transform_10, window_bounds = array<i64: 32, 128>}, {pipeline_mode = #tpu.pipeline_mode<synchronous>, transform_indices = @transform_11, window_bounds = array<i64: 1, 128>}, {pipeline_mode = #tpu.pipeline_mode<synchronous>, transform_indices = @transform_12, window_bounds = array<i64: 128, 32>}, {pipeline_mode = #tpu.pipeline_mode<synchronous>, transform_indices = @transform_13, window_bounds = array<i64: 1, 32>}, {transform_indices = @transform_14, window_bounds = array<i64: 1, 8, 32>}]} {
    %c0 = arith.constant 0 : index
    %c0_0 = arith.constant 0 : index
    %c0_1 = arith.constant 0 : index
    %0 = vector.load %arg1[%c0, %c0_0, %c0_1] : memref<1x8x32xf32, #tpu.memory_space<vmem>>, vector<1x8x32xf32>
    %1 = vector.shape_cast %0 : vector<1x8x32xf32> to vector<8x32xf32>
    %c0_2 = arith.constant 0 : index
    %c0_3 = arith.constant 0 : index
    %c0_4 = arith.constant 0 : index
    %2 = vector.load %arg2[%c0_2, %c0_3, %c0_4] : memref<1x6x32xf32, #tpu.memory_space<vmem>>, vector<1x1x32xf32>
    %3 = vector.shape_cast %2 : vector<1x1x32xf32> to vector<32xf32>
    %c0_5 = arith.constant 0 : index
    %c1 = arith.constant 1 : index
    %c0_6 = arith.constant 0 : index
    %4 = vector.load %arg2[%c0_5, %c1, %c0_6] : memref<1x6x32xf32, #tpu.memory_space<vmem>>, vector<1x1x32xf32>
    %5 = vector.shape_cast %4 : vector<1x1x32xf32> to vector<32xf32>
    %c0_7 = arith.constant 0 : index
    %c2 = arith.constant 2 : index
    %c0_8 = arith.constant 0 : index
    %6 = vector.load %arg2[%c0_7, %c2, %c0_8] : memref<1x6x32xf32, #tpu.memory_space<vmem>>, vector<1x1x32xf32>
    %7 = vector.shape_cast %6 : vector<1x1x32xf32> to vector<32xf32>
    %c0_9 = arith.constant 0 : index
    %c3 = arith.constant 3 : index
    %c0_10 = arith.constant 0 : index
    %8 = vector.load %arg2[%c0_9, %c3, %c0_10] : memref<1x6x32xf32, #tpu.memory_space<vmem>>, vector<1x1x32xf32>
    %9 = vector.shape_cast %8 : vector<1x1x32xf32> to vector<32xf32>
    %c0_11 = arith.constant 0 : index
    %c4 = arith.constant 4 : index
    %c0_12 = arith.constant 0 : index
    %10 = vector.load %arg2[%c0_11, %c4, %c0_12] : memref<1x6x32xf32, #tpu.memory_space<vmem>>, vector<1x1x32xf32>
    %11 = vector.shape_cast %10 : vector<1x1x32xf32> to vector<32xf32>
    %c0_13 = arith.constant 0 : index
    %c5 = arith.constant 5 : index
    %c0_14 = arith.constant 0 : index
    %12 = vector.load %arg2[%c0_13, %c5, %c0_14] : memref<1x6x32xf32, #tpu.memory_space<vmem>>, vector<1x1x32xf32>
    %13 = vector.shape_cast %12 : vector<1x1x32xf32> to vector<32xf32>
    %cst = arith.constant dense<0.000000e+00> : vector<8xf32>
    %14 = vector.multi_reduction <add>, %1, %cst [1] : vector<8x32xf32> to vector<8xf32>
    %15 = vector.shape_cast %14 : vector<8xf32> to vector<8x1xf32>
    %cst_15 = arith.constant 3.200000e+01 : f32
    %16 = vector.broadcast %cst_15 : f32 to vector<8x1xf32>
    %17 = arith.divf %15, %16 : vector<8x1xf32>
    %18 = vector.broadcast %17 : vector<8x1xf32> to vector<8x32xf32>
    %19 = arith.subf %1, %18 : vector<8x32xf32>
    %20 = arith.mulf %19, %19 : vector<8x32xf32>
    %cst_16 = arith.constant dense<0.000000e+00> : vector<8xf32>
    %21 = vector.multi_reduction <add>, %20, %cst_16 [1] : vector<8x32xf32> to vector<8xf32>
    %22 = vector.shape_cast %21 : vector<8xf32> to vector<8x1xf32>
    %cst_17 = arith.constant 3.200000e+01 : f32
    %23 = vector.broadcast %cst_17 : f32 to vector<8x1xf32>
    %24 = arith.divf %22, %23 : vector<8x1xf32>
    %cst_18 = arith.constant 9.99999997E-7 : f32
    %25 = vector.broadcast %cst_18 : f32 to vector<8x1xf32>
    %26 = arith.addf %24, %25 : vector<8x1xf32>
    %27 = math.rsqrt %26 : vector<8x1xf32>
    %28 = vector.broadcast %27 : vector<8x1xf32> to vector<8x32xf32>
    %29 = arith.mulf %19, %28 : vector<8x32xf32>
    %cst_19 = arith.constant 1.000000e+00 : f32
    %30 = vector.broadcast %cst_19 : f32 to vector<32xf32>
    %31 = arith.addf %30, %5 : vector<32xf32>
    %32 = vector.shape_cast %31 : vector<32xf32> to vector<1x32xf32>
    %33 = vector.broadcast %32 : vector<1x32xf32> to vector<8x32xf32>
    %34 = arith.mulf %29, %33 : vector<8x32xf32>
    %35 = vector.shape_cast %3 : vector<32xf32> to vector<1x32xf32>
    %36 = vector.broadcast %35 : vector<1x32xf32> to vector<8x32xf32>
    %37 = arith.addf %34, %36 : vector<8x32xf32>
    %c0_20 = arith.constant 0 : index
    %c0_21 = arith.constant 0 : index
    %38 = vector.load %arg3[%c0_20, %c0_21] : memref<32x32xf32, #tpu.memory_space<vmem>>, vector<32x32xf32>
    %cst_22 = arith.constant dense<0.000000e+00> : vector<8x32xf32>
    %39 = tpu.matmul %37, %38, %cst_22 {dimension_numbers = #tpu.dot_dimension_numbers<[1], [0], [0], [1], [0, 0, 1, 1], [], []>} : vector<8x32xf32>, vector<32x32xf32>, vector<8x32xf32> -> vector<8x32xf32>
    %c0_23 = arith.constant 0 : index
    %c0_24 = arith.constant 0 : index
    %40 = vector.load %arg4[%c0_23, %c0_24] : memref<1x32xf32, #tpu.memory_space<vmem>>, vector<1x32xf32>
    %41 = vector.broadcast %40 : vector<1x32xf32> to vector<8x32xf32>
    %42 = arith.addf %39, %41 : vector<8x32xf32>
    %c0_25 = arith.constant 0 : index
    %c0_26 = arith.constant 0 : index
    %43 = vector.load %arg5[%c0_25, %c0_26] : memref<32x32xf32, #tpu.memory_space<vmem>>, vector<32x32xf32>
    %cst_27 = arith.constant dense<0.000000e+00> : vector<8x32xf32>
    %44 = tpu.matmul %37, %43, %cst_27 {dimension_numbers = #tpu.dot_dimension_numbers<[1], [0], [0], [1], [0, 0, 1, 1], [], []>} : vector<8x32xf32>, vector<32x32xf32>, vector<8x32xf32> -> vector<8x32xf32>
    %c0_28 = arith.constant 0 : index
    %c0_29 = arith.constant 0 : index
    %45 = vector.load %arg6[%c0_28, %c0_29] : memref<1x32xf32, #tpu.memory_space<vmem>>, vector<1x32xf32>
    %46 = vector.broadcast %45 : vector<1x32xf32> to vector<8x32xf32>
    %47 = arith.addf %44, %46 : vector<8x32xf32>
    %c0_30 = arith.constant 0 : index
    %c0_31 = arith.constant 0 : index
    %48 = vector.load %arg7[%c0_30, %c0_31] : memref<32x32xf32, #tpu.memory_space<vmem>>, vector<32x32xf32>
    %cst_32 = arith.constant dense<0.000000e+00> : vector<8x32xf32>
    %49 = tpu.matmul %37, %48, %cst_32 {dimension_numbers = #tpu.dot_dimension_numbers<[1], [0], [0], [1], [0, 0, 1, 1], [], []>} : vector<8x32xf32>, vector<32x32xf32>, vector<8x32xf32> -> vector<8x32xf32>
    %c0_33 = arith.constant 0 : index
    %c0_34 = arith.constant 0 : index
    %50 = vector.load %arg8[%c0_33, %c0_34] : memref<1x32xf32, #tpu.memory_space<vmem>>, vector<1x32xf32>
    %51 = vector.broadcast %50 : vector<1x32xf32> to vector<8x32xf32>
    %52 = arith.addf %49, %51 : vector<8x32xf32>
    %53 = vector.extract_strided_slice %42 {offsets = [0, 0], sizes = [8, 8], strides = [1, 1]} : vector<8x32xf32> to vector<8x8xf32>
    %54 = vector.extract_strided_slice %47 {offsets = [0, 0], sizes = [8, 8], strides = [1, 1]} : vector<8x32xf32> to vector<8x8xf32>
    %55 = vector.extract_strided_slice %52 {offsets = [0, 0], sizes = [8, 8], strides = [1, 1]} : vector<8x32xf32> to vector<8x8xf32>
    %cst_35 = arith.constant dense<0.000000e+00> : vector<8x8xf32>
    %56 = tpu.matmul %53, %54, %cst_35 {dimension_numbers = #tpu.dot_dimension_numbers<[1], [1], [0], [0], [0, 0, 1, 0], [], []>} : vector<8x8xf32>, vector<8x8xf32>, vector<8x8xf32> -> vector<8x8xf32>
    %cst_36 = arith.constant 0.353553385 : f32
    %57 = vector.broadcast %cst_36 : f32 to vector<8x8xf32>
    %58 = arith.mulf %56, %57 : vector<8x8xf32>
    %cst_37 = arith.constant dense<0xFF800000> : vector<8xf32>
    %59 = vector.multi_reduction <maximumf>, %58, %cst_37 [1] : vector<8x8xf32> to vector<8xf32>
    %60 = vector.shape_cast %59 : vector<8xf32> to vector<8x1xf32>
    %61 = vector.broadcast %60 : vector<8x1xf32> to vector<8x8xf32>
    %62 = arith.subf %58, %61 : vector<8x8xf32>
    %63 = math.exp %62 : vector<8x8xf32>
    %cst_38 = arith.constant dense<0.000000e+00> : vector<8xf32>
    %64 = vector.multi_reduction <add>, %63, %cst_38 [1] : vector<8x8xf32> to vector<8xf32>
    %65 = vector.shape_cast %64 : vector<8xf32> to vector<8x1xf32>
    %66 = tpu.reciprocal %65 : vector<8x1xf32> -> vector<8x1xf32>
    %67 = vector.broadcast %66 : vector<8x1xf32> to vector<8x8xf32>
    %68 = arith.mulf %63, %67 : vector<8x8xf32>
    %cst_39 = arith.constant dense<0.000000e+00> : vector<8x8xf32>
    %69 = tpu.matmul %68, %55, %cst_39 {dimension_numbers = #tpu.dot_dimension_numbers<[1], [0], [0], [1], [0, 0, 1, 1], [], []>} : vector<8x8xf32>, vector<8x8xf32>, vector<8x8xf32> -> vector<8x8xf32>
    %70 = vector.extract_strided_slice %42 {offsets = [0, 8], sizes = [8, 8], strides = [1, 1]} : vector<8x32xf32> to vector<8x8xf32>
    %71 = vector.extract_strided_slice %47 {offsets = [0, 8], sizes = [8, 8], strides = [1, 1]} : vector<8x32xf32> to vector<8x8xf32>
    %72 = vector.extract_strided_slice %52 {offsets = [0, 8], sizes = [8, 8], strides = [1, 1]} : vector<8x32xf32> to vector<8x8xf32>
    %cst_40 = arith.constant dense<0.000000e+00> : vector<8x8xf32>
    %73 = tpu.matmul %70, %71, %cst_40 {dimension_numbers = #tpu.dot_dimension_numbers<[1], [1], [0], [0], [0, 0, 1, 0], [], []>} : vector<8x8xf32>, vector<8x8xf32>, vector<8x8xf32> -> vector<8x8xf32>
    %cst_41 = arith.constant 0.353553385 : f32
    %74 = vector.broadcast %cst_41 : f32 to vector<8x8xf32>
    %75 = arith.mulf %73, %74 : vector<8x8xf32>
    %cst_42 = arith.constant dense<0xFF800000> : vector<8xf32>
    %76 = vector.multi_reduction <maximumf>, %75, %cst_42 [1] : vector<8x8xf32> to vector<8xf32>
    %77 = vector.shape_cast %76 : vector<8xf32> to vector<8x1xf32>
    %78 = vector.broadcast %77 : vector<8x1xf32> to vector<8x8xf32>
    %79 = arith.subf %75, %78 : vector<8x8xf32>
    %80 = math.exp %79 : vector<8x8xf32>
    %cst_43 = arith.constant dense<0.000000e+00> : vector<8xf32>
    %81 = vector.multi_reduction <add>, %80, %cst_43 [1] : vector<8x8xf32> to vector<8xf32>
    %82 = vector.shape_cast %81 : vector<8xf32> to vector<8x1xf32>
    %83 = tpu.reciprocal %82 : vector<8x1xf32> -> vector<8x1xf32>
    %84 = vector.broadcast %83 : vector<8x1xf32> to vector<8x8xf32>
    %85 = arith.mulf %80, %84 : vector<8x8xf32>
    %cst_44 = arith.constant dense<0.000000e+00> : vector<8x8xf32>
    %86 = tpu.matmul %85, %72, %cst_44 {dimension_numbers = #tpu.dot_dimension_numbers<[1], [0], [0], [1], [0, 0, 1, 1], [], []>} : vector<8x8xf32>, vector<8x8xf32>, vector<8x8xf32> -> vector<8x8xf32>
    %87 = vector.extract_strided_slice %42 {offsets = [0, 16], sizes = [8, 8], strides = [1, 1]} : vector<8x32xf32> to vector<8x8xf32>
    %88 = vector.extract_strided_slice %47 {offsets = [0, 16], sizes = [8, 8], strides = [1, 1]} : vector<8x32xf32> to vector<8x8xf32>
    %89 = vector.extract_strided_slice %52 {offsets = [0, 16], sizes = [8, 8], strides = [1, 1]} : vector<8x32xf32> to vector<8x8xf32>
    %cst_45 = arith.constant dense<0.000000e+00> : vector<8x8xf32>
    %90 = tpu.matmul %87, %88, %cst_45 {dimension_numbers = #tpu.dot_dimension_numbers<[1], [1], [0], [0], [0, 0, 1, 0], [], []>} : vector<8x8xf32>, vector<8x8xf32>, vector<8x8xf32> -> vector<8x8xf32>
    %cst_46 = arith.constant 0.353553385 : f32
    %91 = vector.broadcast %cst_46 : f32 to vector<8x8xf32>
    %92 = arith.mulf %90, %91 : vector<8x8xf32>
    %cst_47 = arith.constant dense<0xFF800000> : vector<8xf32>
    %93 = vector.multi_reduction <maximumf>, %92, %cst_47 [1] : vector<8x8xf32> to vector<8xf32>
    %94 = vector.shape_cast %93 : vector<8xf32> to vector<8x1xf32>
    %95 = vector.broadcast %94 : vector<8x1xf32> to vector<8x8xf32>
    %96 = arith.subf %92, %95 : vector<8x8xf32>
    %97 = math.exp %96 : vector<8x8xf32>
    %cst_48 = arith.constant dense<0.000000e+00> : vector<8xf32>
    %98 = vector.multi_reduction <add>, %97, %cst_48 [1] : vector<8x8xf32> to vector<8xf32>
    %99 = vector.shape_cast %98 : vector<8xf32> to vector<8x1xf32>
    %100 = tpu.reciprocal %99 : vector<8x1xf32> -> vector<8x1xf32>
    %101 = vector.broadcast %100 : vector<8x1xf32> to vector<8x8xf32>
    %102 = arith.mulf %97, %101 : vector<8x8xf32>
    %cst_49 = arith.constant dense<0.000000e+00> : vector<8x8xf32>
    %103 = tpu.matmul %102, %89, %cst_49 {dimension_numbers = #tpu.dot_dimension_numbers<[1], [0], [0], [1], [0, 0, 1, 1], [], []>} : vector<8x8xf32>, vector<8x8xf32>, vector<8x8xf32> -> vector<8x8xf32>
    %104 = vector.extract_strided_slice %42 {offsets = [0, 24], sizes = [8, 8], strides = [1, 1]} : vector<8x32xf32> to vector<8x8xf32>
    %105 = vector.extract_strided_slice %47 {offsets = [0, 24], sizes = [8, 8], strides = [1, 1]} : vector<8x32xf32> to vector<8x8xf32>
    %106 = vector.extract_strided_slice %52 {offsets = [0, 24], sizes = [8, 8], strides = [1, 1]} : vector<8x32xf32> to vector<8x8xf32>
    %cst_50 = arith.constant dense<0.000000e+00> : vector<8x8xf32>
    %107 = tpu.matmul %104, %105, %cst_50 {dimension_numbers = #tpu.dot_dimension_numbers<[1], [1], [0], [0], [0, 0, 1, 0], [], []>} : vector<8x8xf32>, vector<8x8xf32>, vector<8x8xf32> -> vector<8x8xf32>
    %cst_51 = arith.constant 0.353553385 : f32
    %108 = vector.broadcast %cst_51 : f32 to vector<8x8xf32>
    %109 = arith.mulf %107, %108 : vector<8x8xf32>
    %cst_52 = arith.constant dense<0xFF800000> : vector<8xf32>
    %110 = vector.multi_reduction <maximumf>, %109, %cst_52 [1] : vector<8x8xf32> to vector<8xf32>
    %111 = vector.shape_cast %110 : vector<8xf32> to vector<8x1xf32>
    %112 = vector.broadcast %111 : vector<8x1xf32> to vector<8x8xf32>
    %113 = arith.subf %109, %112 : vector<8x8xf32>
    %114 = math.exp %113 : vector<8x8xf32>
    %cst_53 = arith.constant dense<0.000000e+00> : vector<8xf32>
    %115 = vector.multi_reduction <add>, %114, %cst_53 [1] : vector<8x8xf32> to vector<8xf32>
    %116 = vector.shape_cast %115 : vector<8xf32> to vector<8x1xf32>
    %117 = tpu.reciprocal %116 : vector<8x1xf32> -> vector<8x1xf32>
    %118 = vector.broadcast %117 : vector<8x1xf32> to vector<8x8xf32>
    %119 = arith.mulf %114, %118 : vector<8x8xf32>
    %cst_54 = arith.constant dense<0.000000e+00> : vector<8x8xf32>
    %120 = tpu.matmul %119, %106, %cst_54 {dimension_numbers = #tpu.dot_dimension_numbers<[1], [0], [0], [1], [0, 0, 1, 1], [], []>} : vector<8x8xf32>, vector<8x8xf32>, vector<8x8xf32> -> vector<8x8xf32>
    %121 = tpu.concatenate %69, %86, %103, %120 in 1 : vector<8x8xf32>, vector<8x8xf32>, vector<8x8xf32>, vector<8x8xf32> -> vector<8x32xf32>
    %c0_55 = arith.constant 0 : index
    %c0_56 = arith.constant 0 : index
    %122 = vector.load %arg9[%c0_55, %c0_56] : memref<32x32xf32, #tpu.memory_space<vmem>>, vector<32x32xf32>
    %cst_57 = arith.constant dense<0.000000e+00> : vector<8x32xf32>
    %123 = tpu.matmul %121, %122, %cst_57 {dimension_numbers = #tpu.dot_dimension_numbers<[1], [0], [0], [1], [0, 0, 1, 1], [], []>} : vector<8x32xf32>, vector<32x32xf32>, vector<8x32xf32> -> vector<8x32xf32>
    %c0_58 = arith.constant 0 : index
    %c0_59 = arith.constant 0 : index
    %124 = vector.load %arg10[%c0_58, %c0_59] : memref<1x32xf32, #tpu.memory_space<vmem>>, vector<1x32xf32>
    %125 = vector.broadcast %124 : vector<1x32xf32> to vector<8x32xf32>
    %126 = arith.addf %123, %125 : vector<8x32xf32>
    %127 = vector.shape_cast %7 : vector<32xf32> to vector<1x32xf32>
    %128 = vector.broadcast %127 : vector<1x32xf32> to vector<8x32xf32>
    %129 = arith.mulf %128, %126 : vector<8x32xf32>
    %130 = arith.addf %1, %129 : vector<8x32xf32>
    %cst_60 = arith.constant dense<0.000000e+00> : vector<8xf32>
    %131 = vector.multi_reduction <add>, %130, %cst_60 [1] : vector<8x32xf32> to vector<8xf32>
    %132 = vector.shape_cast %131 : vector<8xf32> to vector<8x1xf32>
    %cst_61 = arith.constant 3.200000e+01 : f32
    %133 = vector.broadcast %cst_61 : f32 to vector<8x1xf32>
    %134 = arith.divf %132, %133 : vector<8x1xf32>
    %135 = vector.broadcast %134 : vector<8x1xf32> to vector<8x32xf32>
    %136 = arith.subf %130, %135 : vector<8x32xf32>
    %137 = arith.mulf %136, %136 : vector<8x32xf32>
    %cst_62 = arith.constant dense<0.000000e+00> : vector<8xf32>
    %138 = vector.multi_reduction <add>, %137, %cst_62 [1] : vector<8x32xf32> to vector<8xf32>
    %139 = vector.shape_cast %138 : vector<8xf32> to vector<8x1xf32>
    %cst_63 = arith.constant 3.200000e+01 : f32
    %140 = vector.broadcast %cst_63 : f32 to vector<8x1xf32>
    %141 = arith.divf %139, %140 : vector<8x1xf32>
    %cst_64 = arith.constant 9.99999997E-7 : f32
    %142 = vector.broadcast %cst_64 : f32 to vector<8x1xf32>
    %143 = arith.addf %141, %142 : vector<8x1xf32>
    %144 = math.rsqrt %143 : vector<8x1xf32>
    %145 = vector.broadcast %144 : vector<8x1xf32> to vector<8x32xf32>
    %146 = arith.mulf %136, %145 : vector<8x32xf32>
    %cst_65 = arith.constant 1.000000e+00 : f32
    %147 = vector.broadcast %cst_65 : f32 to vector<32xf32>
    %148 = arith.addf %147, %11 : vector<32xf32>
    %149 = vector.shape_cast %148 : vector<32xf32> to vector<1x32xf32>
    %150 = vector.broadcast %149 : vector<1x32xf32> to vector<8x32xf32>
    %151 = arith.mulf %146, %150 : vector<8x32xf32>
    %152 = vector.shape_cast %9 : vector<32xf32> to vector<1x32xf32>
    %153 = vector.broadcast %152 : vector<1x32xf32> to vector<8x32xf32>
    %154 = arith.addf %151, %153 : vector<8x32xf32>
    %c0_66 = arith.constant 0 : index
    %c0_67 = arith.constant 0 : index
    %155 = vector.load %arg11[%c0_66, %c0_67] : memref<32x128xf32, #tpu.memory_space<vmem>>, vector<32x128xf32>
    %cst_68 = arith.constant dense<0.000000e+00> : vector<8x128xf32>
    %156 = tpu.matmul %154, %155, %cst_68 {dimension_numbers = #tpu.dot_dimension_numbers<[1], [0], [0], [1], [0, 0, 1, 1], [], []>} : vector<8x32xf32>, vector<32x128xf32>, vector<8x128xf32> -> vector<8x128xf32>
    %c0_69 = arith.constant 0 : index
    %c0_70 = arith.constant 0 : index
    %157 = vector.load %arg12[%c0_69, %c0_70] : memref<1x128xf32, #tpu.memory_space<vmem>>, vector<1x128xf32>
    %158 = vector.broadcast %157 : vector<1x128xf32> to vector<8x128xf32>
    %159 = arith.addf %156, %158 : vector<8x128xf32>
    %160 = arith.mulf %159, %159 : vector<8x128xf32>
    %161 = arith.mulf %159, %160 : vector<8x128xf32>
    %cst_71 = arith.constant 4.471500e-02 : f32
    %162 = vector.broadcast %cst_71 : f32 to vector<8x128xf32>
    %163 = arith.mulf %162, %161 : vector<8x128xf32>
    %164 = arith.addf %159, %163 : vector<8x128xf32>
    %cst_72 = arith.constant 0.797884583 : f32
    %165 = vector.broadcast %cst_72 : f32 to vector<8x128xf32>
    %166 = arith.mulf %165, %164 : vector<8x128xf32>
    %167 = math.tanh %166 : vector<8x128xf32>
    %cst_73 = arith.constant 1.000000e+00 : f32
    %168 = vector.broadcast %cst_73 : f32 to vector<8x128xf32>
    %169 = arith.addf %168, %167 : vector<8x128xf32>
    %cst_74 = arith.constant 5.000000e-01 : f32
    %170 = vector.broadcast %cst_74 : f32 to vector<8x128xf32>
    %171 = arith.mulf %170, %169 : vector<8x128xf32>
    %172 = arith.mulf %159, %171 : vector<8x128xf32>
    %c0_75 = arith.constant 0 : index
    %c0_76 = arith.constant 0 : index
    %173 = vector.load %arg13[%c0_75, %c0_76] : memref<128x32xf32, #tpu.memory_space<vmem>>, vector<128x32xf32>
    %cst_77 = arith.constant dense<0.000000e+00> : vector<8x32xf32>
    %174 = tpu.matmul %172, %173, %cst_77 {dimension_numbers = #tpu.dot_dimension_numbers<[1], [0], [0], [1], [0, 0, 1, 1], [], []>} : vector<8x128xf32>, vector<128x32xf32>, vector<8x32xf32> -> vector<8x32xf32>
    %c0_78 = arith.constant 0 : index
    %c0_79 = arith.constant 0 : index
    %175 = vector.load %arg14[%c0_78, %c0_79] : memref<1x32xf32, #tpu.memory_space<vmem>>, vector<1x32xf32>
    %176 = vector.broadcast %175 : vector<1x32xf32> to vector<8x32xf32>
    %177 = arith.addf %174, %176 : vector<8x32xf32>
    %178 = vector.shape_cast %13 : vector<32xf32> to vector<1x32xf32>
    %179 = vector.broadcast %178 : vector<1x32xf32> to vector<8x32xf32>
    %180 = arith.mulf %179, %177 : vector<8x32xf32>
    %181 = arith.addf %130, %180 : vector<8x32xf32>
    %c0_80 = arith.constant 0 : index
    %c0_81 = arith.constant 0 : index
    %c0_82 = arith.constant 0 : index
    %182 = vector.load %arg15[%c0_80, %c0_81, %c0_82] : memref<1x8x32xf32, #tpu.memory_space<vmem>>, vector<1x8x32xf32>
    %183 = vector.shape_cast %182 : vector<1x8x32xf32> to vector<8x32xf32>
    %184 = vector.shape_cast %181 : vector<8x32xf32> to vector<1x8x32xf32>
    tpu.vector_store %arg15[%c0_80, %c0_81, %c0_82], %184 {strides = array<i32>} : memref<1x8x32xf32, #tpu.memory_space<vmem>>, vector<1x8x32xf32>,
    return
  }
  func.func @transform_0(%arg0: i32) -> (i32, i32, i32) {
    %c0_i32 = arith.constant 0 : i32
    %c0_i32_0 = arith.constant 0 : i32
    %c0_i32_1 = arith.constant 0 : i32
    return %arg0, %c0_i32, %c0_i32_0 : i32, i32, i32
  }
  func.func @transform_1(%arg0: i32) -> (i32, i32, i32) {
    %c0_i32 = arith.constant 0 : i32
    %c0_i32_0 = arith.constant 0 : i32
    %c0_i32_1 = arith.constant 0 : i32
    return %arg0, %c0_i32, %c0_i32_0 : i32, i32, i32
  }
  func.func @transform_2(%arg0: i32) -> (i32, i32) {
    %c0_i32 = arith.constant 0 : i32
    %c0_i32_0 = arith.constant 0 : i32
    %c0_i32_1 = arith.constant 0 : i32
    return %c0_i32, %c0_i32_0 : i32, i32
  }
  func.func @transform_3(%arg0: i32) -> (i32, i32) {
    %c0_i32 = arith.constant 0 : i32
    %c0_i32_0 = arith.constant 0 : i32
    %c0_i32_1 = arith.constant 0 : i32
    return %c0_i32, %c0_i32_0 : i32, i32
  }
  func.func @transform_4(%arg0: i32) -> (i32, i32) {
    %c0_i32 = arith.constant 0 : i32
    %c0_i32_0 = arith.constant 0 : i32
    %c0_i32_1 = arith.constant 0 : i32
    return %c0_i32, %c0_i32_0 : i32, i32
  }
  func.func @transform_5(%arg0: i32) -> (i32, i32) {
    %c0_i32 = arith.constant 0 : i32
    %c0_i32_0 = arith.constant 0 : i32
    %c0_i32_1 = arith.constant 0 : i32
    return %c0_i32, %c0_i32_0 : i32, i32
  }
  func.func @transform_6(%arg0: i32) -> (i32, i32) {
    %c0_i32 = arith.constant 0 : i32
    %c0_i32_0 = arith.constant 0 : i32
    %c0_i32_1 = arith.constant 0 : i32
    return %c0_i32, %c0_i32_0 : i32, i32
  }
  func.func @transform_7(%arg0: i32) -> (i32, i32) {
    %c0_i32 = arith.constant 0 : i32
    %c0_i32_0 = arith.constant 0 : i32
    %c0_i32_1 = arith.constant 0 : i32
    return %c0_i32, %c0_i32_0 : i32, i32
  }
  func.func @transform_8(%arg0: i32) -> (i32, i32) {
    %c0_i32 = arith.constant 0 : i32
    %c0_i32_0 = arith.constant 0 : i32
    %c0_i32_1 = arith.constant 0 : i32
    return %c0_i32, %c0_i32_0 : i32, i32
  }
  func.func @transform_9(%arg0: i32) -> (i32, i32) {
    %c0_i32 = arith.constant 0 : i32
    %c0_i32_0 = arith.constant 0 : i32
    %c0_i32_1 = arith.constant 0 : i32
    return %c0_i32, %c0_i32_0 : i32, i32
  }
  func.func @transform_10(%arg0: i32) -> (i32, i32) {
    %c0_i32 = arith.constant 0 : i32
    %c0_i32_0 = arith.constant 0 : i32
    %c0_i32_1 = arith.constant 0 : i32
    return %c0_i32, %c0_i32_0 : i32, i32
  }
  func.func @transform_11(%arg0: i32) -> (i32, i32) {
    %c0_i32 = arith.constant 0 : i32
    %c0_i32_0 = arith.constant 0 : i32
    %c0_i32_1 = arith.constant 0 : i32
    return %c0_i32, %c0_i32_0 : i32, i32
  }
  func.func @transform_12(%arg0: i32) -> (i32, i32) {
    %c0_i32 = arith.constant 0 : i32
    %c0_i32_0 = arith.constant 0 : i32
    %c0_i32_1 = arith.constant 0 : i32
    return %c0_i32, %c0_i32_0 : i32, i32
  }
  func.func @transform_13(%arg0: i32) -> (i32, i32) {
    %c0_i32 = arith.constant 0 : i32
    %c0_i32_0 = arith.constant 0 : i32
    %c0_i32_1 = arith.constant 0 : i32
    return %c0_i32, %c0_i32_0 : i32, i32
  }
  func.func @transform_14(%arg0: i32) -> (i32, i32, i32) {
    %c0_i32 = arith.constant 0 : i32
    %c0_i32_0 = arith.constant 0 : i32
    %c0_i32_1 = arith.constant 0 : i32
    return %arg0, %c0_i32, %c0_i32_0 : i32, i32, i32
  }
}

</mosaic_0001>

<bundles_post_ra>
// kernel: tpu_custom_call.1
= control target key start
LH: loop header
LB: loop body
LE: loop exit
PB: predicated region body
PF: predicated region fallthrough
CT: control target
= control target key end

     0   :  { %s3018_s0 = inlined_call_operand.vmem [shape: f32[2,8,32], index: 0, kind: input, shape index: {}]   ;;  %s3019_s1 = inlined_call_operand.vmem [shape: f32[2,6,32], index: 1, kind: input, shape index: {}]   ;;  %s3020_s2 = inlined_call_operand.vmem [shape: f32[32,32], index: 2, kind: input, shape index: {}]   ;;  %s3021_s3 = inlined_call_operand.vmem [shape: f32[1,32], index: 3, kind: input, shape index: {}]   ;;  %s3022_s4 = inlined_call_operand.vmem [shape: f32[32,32], index: 4, kind: input, shape index: {}]   ;;  %s3023_s5 = inlined_call_operand.hbm [shape: f32[1,32], index: 5, kind: input, shape index: {}]   ;;  %s3024_s6 = inlined_call_operand.vmem [shape: f32[32,32], index: 6, kind: input, shape index: {}]   ;;  %s3025_s7 = inlined_call_operand.hbm [shape: f32[1,32], index: 7, kind: input, shape index: {}]   ;;  %s3026_s8 = inlined_call_operand.vmem [shape: f32[32,32], index: 8, kind: input, shape index: {}]   ;;  %s3027_s9 = inlined_call_operand.hbm [shape: f32[1,32], index: 9, kind: input, shape index: {}]   ;;  %s3028_s10 = inlined_call_operand.vmem [shape: f32[32,128], index: 10, kind: input, shape index: {}]   ;;  %s3029_s11 = inlined_call_operand.hbm [shape: f32[1,128], index: 11, kind: input, shape index: {}]   ;;  %s3030_s12 = inlined_call_operand.vmem [shape: f32[128,32], index: 12, kind: input, shape index: {}]   ;;  %s3031_s13 = inlined_call_operand.hbm [shape: f32[1,32], index: 13, kind: input, shape index: {}]   ;;  %s3032_s14 = inlined_call_operand.hbm [shape: f32[2,8,32], index: 14, kind: output, shape index: {}]  }
   0x1   :  { %3041 = sst [smem:[#allocation21_spill]] %s3025_s7 }
   0x2   :  { %19 = vsyncpa [#allocation3], 0 }
   0x3   :  { %20 = vsyncpa [#allocation6], 0 }
   0x4   :  { %21 = vsyncpa [#allocation9], 0 }
   0x5   :  { %22 = vsyncpa [#allocation4], 0 }
   0x6   :  { %24 = vsyncpa [#allocation4 + $0x1], 0  ;;  %s2591_s29 = smov 0   ;;  %s2593_s30 = smov 0  }
   0x7   :  { %s2595_s15 = smov 0   ;;  %s2597_s16 = smov 0  }
   0x8 LB: > { %3042 = sst [smem:[#allocation16_spill]] %s2488_s29  ;;  %s2612_s17 = sadd.s32 4294967295, %s2500_s16   ;;  %s2500_s16 = sphi %s2597_s16, %s3064_s16   ;;  %s2496_s15 = sphi %s2595_s15, %s3066_s15   ;;  %s2492_s30 = sphi %s2593_s30, %s3068_s30   ;;  %s2488_s29 = sphi %s2591_s29, %s3067_s29  }
   0x9   : > { %3043 = sst [smem:[#allocation17_spill]] %s2496_s15  ;;  %s1942_s18 = sadd.s32 4294967294, %s2500_s16  }
   0xa   : > { %s2616_s19 = sadd.s32 1, %s2500_s16   ;;  %s341_s20 = sadd.s32 1, %s2496_s15 }
   0xb   : > { %3044 = sst [smem:[#allocation18_spill]] %s2616_s19  ;;  %s338_s21 = ssub.s32 %s2500_s16, %s2616_s19 }
   0xc   : > { %p351_p0 = scmp.ne.s32.totalorder %s2496_s15, %s2492_s30  ;;  %p339_p1 = scmp.eq.s32.totalorder %s338_s21, 0 }
   0xd   : > { %p352_p2 = scmp.eq.s32.totalorder %s2612_s17, 1  ;;  %p357_p3 = scmp.ne.s32.totalorder %s2492_s30, %s2488_s29 }
   0xe   : > { %p358_p4 = scmp.eq.s32.totalorder %s1942_s18, 1  ;;  %p1943_p7 = scmp.ge.s32.totalorder %s2500_s16, 1 }
   0xf   : > { %s2627_s22 = scalar_select %p339_p1, %s2496_s15, %s341_s20  }
  0x10   : > { %p2629_p5 = por %p352_p2, %p351_p0  ;;  %p2633_p6 = por %p358_p4, %p357_p3 }
  0x11   : > { %3045 = sst [smem:[#allocation19_spill]] %s2627_s22  ;;  %p365_p8 = scmp.lt.s32.totalorder %s2500_s16, 3 }
  0x12   : > { %s3046_s23 = scalar_select %p2629_p5, 1, 0 }
  0x13   : > { %s3047_s24 = scalar_select %p2633_p6, 1, 0 }
  0x14   : > { %p3037_p9 = scmp.eq.s32.totalorder %s2612_s17, 0  ;;  %p2640_p10 = pnand %p1943_p7, %p365_p8 }
  0x15   : > { %3048 = sst [smem:[#allocation20_spill]] %s3047_s24  ;;  %s2502_s26 = smov [#allocation5]  }
  0x16   : > { %s3049_s25 = scalar_select %p2640_p10, 1, 0 }
  0x17   : > { %s401_s27 = sshll.u32 %s2502_s26, 4  ;;  %p2200_p11 = pneg %p2640_p10  ;;  %s402_s27 = int_to_ptr.vmem [resolvable:$true] %s401_s27 }
  0x18   : > { %s2503_s28 = smov [#allocation8]   ;;  %s2504_s21 = smov [#allocation2]  }
  0x19   : > { %s429_s18 = sshll.u32 %s2503_s28, 4  ;;  %p2648_p12 = pnand %p3037_p9, %p2200_p11  ;;  %s430_s18 = int_to_ptr.vmem [resolvable:$true] %s429_s18 }
  0x1a   : > { %s387_s22 = sshll.u32 %s2504_s21, 4  ;;  %s2309_s26 = scalar_lea.vmem %s402_s27, 16  ;;  %s2652_s22 = int_to_ptr.vmem [resolvable:$true] %s387_s22 }
  0x1b   : > { %p2656_p13 = pneg %p2648_p12  ;;  %p2310_p0 = scmp.ne.s32.totalorder %s402_s27, %s2309_s26 }
  0x1c   : > { %s2316_s28 = scalar_lea.vmem %s402_s27, 32  ;;  %p2317_p3 = scmp.lt.s32.totalorder %s402_s27, %s402_s27 }
  0x1d   : > { %p2312_p1 = pnand %p2310_p0, %p2656_p13  ;;  %p2318_p4 = scmp.lt.s32.totalorder %s2316_s28, %s2309_s26 }
  0x1f   : > { %p2313_p2 = pneg %p2312_p1  ;;  %p2319_p7 = por %p2318_p4, %p2317_p3 }
  0x21   : > { %p2320_p8 = pnand %p2319_p7, %p2313_p2 }
  0x23   : > { %2323 = shalt.err (!%p2320_p8)
}
  0x24   : > { %s3052_s7 = sld [smem:[#allocation21_spill]]  ;;  %s2335_s24 = scalar_lea.vmem %s430_s18, 16 }
  0x25   : > { %p2336_p11 = scmp.ne.s32.totalorder %s430_s18, %s2335_s24  ;;  %s2342_s29 = scalar_lea.vmem %s430_s18, 32 }
  0x26   : > { %p2343_p0 = scmp.lt.s32.totalorder %s430_s18, %s430_s18  ;;  %p2344_p1 = scmp.lt.s32.totalorder %s2342_s29, %s2335_s24 }
  0x27   : > { %p2338_p9 = pnand %p2336_p11, %p2656_p13 }
  0x28   : > { %p2345_p5 = por %p2344_p1, %p2343_p0 }
  0x29   : > { %p2339_p6 = pneg %p2338_p9 }
  0x2a   : > { %2206 = dma.hbm_to_vmem [thread:$0]  (!%p2648_p12), %s3052_s7, 16, %s402_s27, [#allocation6]  }
  0x2b   : > { %p2346_p10 = pnand %p2345_p5, %p2339_p6 }
  0x2d   : > { %2349 = shalt.err (!%p2346_p10)
}
  0x2e   : > { %2212 = dma.hbm_to_vmem [thread:$0]  (!%p2648_p12), %s3029_s11, 16, %s430_s18, [#allocation9]  }
  0x2f   : > { %s2361_s19 = scalar_lea.vmem %s2652_s22, 16  ;;  %s2368_s29 = scalar_lea.vmem %s2652_s22, 32 }
  0x30   : > { %p2362_p2 = scmp.ne.s32.totalorder %s2652_s22, %s2361_s19  ;;  %p2369_p5 = scmp.lt.s32.totalorder %s2652_s22, %s2652_s22 }
  0x31   : > { %p2370_p6 = scmp.lt.s32.totalorder %s2368_s29, %s2361_s19 }
  0x32   : > { %p2364_p9 = pnand %p2362_p2, %p2656_p13 }
  0x33   : > { %p2371_p10 = por %p2370_p6, %p2369_p5 }
  0x34   : > { %p2365_p3 = pneg %p2364_p9 }
  0x36   : > { %p2372_p4 = pnand %p2371_p10, %p2365_p3 }
  0x38   : > { %2375 = shalt.err (!%p2372_p4)
}
  0x39   : > { %2203 = dma.hbm_to_vmem [thread:$0]  (!%p2648_p12), %s3023_s5, 16, %s2652_s22, [#allocation3]  }
  0x3a   : > { %s2505_s18 = smov [#allocation7]   ;;  %s2506_s26 = smov [#allocation10]  }
  0x3b   : > { %s415_s21 = sshll.u32 %s2505_s18, 4  ;;  %s443_s28 = sshll.u32 %s2506_s26, 4  ;;  %s416_s21 = int_to_ptr.vmem [resolvable:$true] %s415_s21  ;;  %s444_s28 = int_to_ptr.vmem [resolvable:$true] %s443_s28 }
  0x3c   : > { %s2387_s7 = scalar_lea.vmem %s416_s21, 16  ;;  %s2394_s19 = scalar_lea.vmem %s416_s21, 32 }
  0x3d   : > { %p2388_p7 = scmp.ne.s32.totalorder %s416_s21, %s2387_s7  ;;  %p2395_p0 = scmp.lt.s32.totalorder %s416_s21, %s416_s21 }
  0x3e   : > { %p2396_p1 = scmp.lt.s32.totalorder %s2394_s19, %s2387_s7 }
  0x3f   : > { %p2390_p8 = pnand %p2388_p7, %p2656_p13 }
  0x40   : > { %p2397_p2 = por %p2396_p1, %p2395_p0 }
  0x41   : > { %p2391_p11 = pneg %p2390_p8 }
  0x43   : > { %p2398_p9 = pnand %p2397_p2, %p2391_p11 }
  0x45   : > { %2401 = shalt.err (!%p2398_p9)
}
  0x46   : > { %2209 = dma.hbm_to_vmem [thread:$0]  (!%p2648_p12), %s3027_s9, 16, %s416_s21, [#allocation6]  }
  0x47   : > { %s2413_s24 = scalar_lea.vmem %s444_s28, 16  ;;  %s2420_s27 = scalar_lea.vmem %s444_s28, 32 }
  0x48   : > { %p2414_p3 = scmp.ne.s32.totalorder %s444_s28, %s2413_s24  ;;  %p2421_p10 = scmp.lt.s32.totalorder %s444_s28, %s444_s28 }
  0x49   : > { %p2422_p4 = scmp.lt.s32.totalorder %s2420_s27, %s2413_s24 }
  0x4a   : > { %p2416_p5 = pnand %p2414_p3, %p2656_p13 }
  0x4b   : > { %p2423_p7 = por %p2422_p4, %p2421_p10 }
  0x4c   : > { %p2417_p6 = pneg %p2416_p5 }
  0x4e   : > { %p2424_p8 = pnand %p2423_p7, %p2417_p6 }
  0x50   : > { %2427 = shalt.err (!%p2424_p8)
}
  0x51   : > { %2215 = dma.hbm_to_vmem [thread:$0]  (!%p2648_p12), %s3031_s13, 16, %s444_s28, [#allocation9]  }
  0x52   : > { %p3053_p11 = scmp.ne.s32.totalorder %s3049_s25, 0 }
  0x53   : > { %p3054_p0 = scmp.eq.s32.totalorder (!%p3053_p11), %s2612_s17, 0 }
  0x54   : > { %470 = sbr.rel (%p3053_p11) target bundleno = 2545 (0x9f1), region = 76 }
  0x59   : > { %2471 = dma.done.wait (%p3054_p0), [#allocation3], 16   ;;  %p3055_p13 = pmov %p3054_p0 }
  0x5a   : > { %p3056_p1 = pmov %p3054_p0 }
  0x5b   : > { %2473 = vsyncadd (%p3055_p13), [#allocation3], 4294967280 }
  0x5c   : > { %2475 = dma.done.wait (%p3056_p1), [#allocation6], 32   ;;  %p3057_p2 = pmov %p3054_p0 }
  0x5d   : > { %p3058_p9 = pmov %p3054_p0 }
  0x5e   : > { %2477 = vsyncadd (%p3057_p2), [#allocation6], 4294967264 }
  0x5f   : > { %2479 = dma.done.wait (%p3058_p9), [#allocation9], 32   ;;  %p3059_p12 = pmov %p3054_p0 }
  0x60   : > { %p535_p3 = scmp.lt.s32.totalorder %s2612_s17, 1  ;;  %vm550_vm0 = vcmask 261120   ;;  %v579_v7 = vld [vmem:[%s3020_s2 + $0x18] sm:$0xff]  ;;  %v2507_v8 = vmov 0.0   ;;  %v578_v9 = vld [vmem:[%s3020_s2 + $0x10] sm:$0xff]  ;;  %vm2508_vm1 = vmmov 0   ;;  %v566_v15 = vlaneseq }
  0x61   : > { %2481 = vsyncadd (%p3059_p12), [#allocation9], 4294967264  ;;  %2048 = vmatprep.subr.mxu1 %v2507_v8  ;;  %2056 = vmatprep.mubr.msk.f32.mxu1 %vm2508_vm1, %v2507_v8  ;;  %v577_v10 = vld [vmem:[%s3020_s2 + $0x8] sm:$0xff]  ;;  %v576_v11 = vld [vmem:[%s3020_s2] sm:$0xff]  ;;  %s2509_s24 = smov 120   ;;  %vm822_vm2 = vcmask 64512  }
  0x62   : > { %s2717_s15 = scalar_select %p535_p3, %s2612_s17, 1  ;;  %2049 = vmatpush3.msra.mxu1 %v579_v7  ;;  %2091 = vmatprep.subr.mxu0 %v2507_v8  ;;  %v2760_v16 = vshrl.u32 %v566_v15, 7  ;;  %v663_v26 = vld [vmem:[%s3022_s4 + $0x18] sm:$0xff]  ;;  %v662_v27 = vld [vmem:[%s3022_s4 + $0x10] sm:$0xff]  ;;  %v661_v28 = vld [vmem:[%s3022_s4 + $0x8] sm:$0xff]  ;;  %vm1496_vm3 = vcmask 130048  }
  0x63   : > { %2050 = vmatprep.subr.mxu1 %v2507_v8  ;;  %2093 = vmatprep.mubr.msk.f32.mxu0 %vm2508_vm1, %v2507_v8  ;;  %v660_v29 = vld [vmem:[%s3022_s4] sm:$0xff]  ;;  %v744_v30 = vld [vmem:[%s3024_s6 + $0x18] sm:$0xff]  ;;  %v743_v31 = vld [vmem:[%s3024_s6 + $0x10] sm:$0xff]  ;;  %s2510_s27 = smov 112   ;;  %s2511_s7 = smov 104   ;;  %vm1498_vm4 = vcmask 195584  }
  0x64   : > { %s1957_s25 = sshll.u32 %s2717_s15, 3  ;;  %2051 = vmatpush3.msra.mxu1 %v578_v9  ;;  %v568_v19 = vsub.s32 0, %v2760_v16  ;;  %v742_v32 = vld [vmem:[%s3024_s6 + $0x8] sm:$0xff]  ;;  %v741_v33 = vld [vmem:[%s3024_s6] sm:$0xff]  ;;  %s2512_s19 = smov 8  }
  0x65   : > { %s538_s26 = scalar_lea.vmem %s3018_s0, %s1957_s25  ;;  %2052 = vmatprep.subr.mxu1 %v2507_v8  ;;  %v1960_v34 = vld [vmem:[%s3021_s3] ss:$0 sm:$0xff]  ;;  %v1964_v42 = vld [vmem:[#allocation5] ss:$0 sm:$0xff]  ;;  %s2513_s29 = smov 16   ;;  %v1720_v16 = vld [vmem:[%s3030_s12 + $0x68] sm:$0xff] }
  0x66   : > { %v2725_v0 = vld [vmem:[%s538_s26] sm:$0xff]  ;;  %2053 = vmatpush3.msra.mxu1 %v577_v10  ;;  %s2758_s26 = scalar_lea.vmem %s3019_s1, %s1957_s25  ;;  %s532_s15 = sand.u32 1, %s2492_s30  }
  0x67   : > { %v551_v1 = vsel %vm550_vm0, %v2725_v0, 0.0  ;;  %2054 = vmatprep.subr.mxu1 %v2507_v8  ;;  %v545_v17 = vld [vmem:[%s2758_s26 + $0x1] sm:$0x1]  ;;  %v1959_v23 = vld [vmem:[%s2758_s26] ss:$0 sm:$0xff]  ;;  %s1956_s28 = sshll.u32 %s532_s15, 3 }
  0x68   : > { %552 = vadd.xlane.f32.xlu0 %v551_v1  ;;  %2055 = vmatpush3.msra.mxu1 %v576_v11  ;;  %v565_v18 = vadd.f32 1.0, %v545_v17  ;;  %v1962_v38 = vld [vmem:[#allocation2] ss:$0 sm:$0xff]  ;;  %s1987_s25 = sshll.u32 %s2612_s17, 7  ;;  %p3060_p6 = scmp.ne.s32.totalorder %s3046_s23, 0 }
  0x69   : > { %2059 = vmatprep.subr.mxu1 %v2507_v8 }
  0x6a   : > { %v569_v20 = vrot.slane %v565_v18, %v568_v19 }
  0xf1   : > { %v553_v2 = vpop.xlane.xlu0 %552 }
  0xf2   : > { %v555_v3 = vmul.f32 0.03125, %v553_v2 }
  0xf4   : > { %v556_v4 = vsub.f32 %v2725_v0, %v555_v3 }
  0xf6   : > { %v557_v5 = vmul.f32 %v556_v4, %v556_v4 }
  0xf8   : > { %v558_v6 = vsel %vm550_vm0, %v557_v5, 0.0 }
  0xf9   : > { %559 = vadd.xlane.f32.xlu0 %v558_v6 }
 0x182   : > { %v560_v12 = vpop.xlane.xlu0 %559 }
 0x183   : > { %v561_v13 = vmul.f32 0.03125, %v560_v12 }
 0x185   : > { %v562_v14 = vadd.f32 1e-06, %v561_v13 }
 0x187   : > { %2276 = vrsqrt.f32 %v562_v14 }
 0x194   : > { %v2277_v21 = vpop.eup %2276 }
 0x195   : > { %v564_v22 = vmul.f32 %v2277_v21, %v556_v4 }
 0x197   : > { %v570_v24 = vmul.f32 %v569_v20, %v564_v22 }
 0x199   : > { %v575_v25 = vadd.f32 %v1959_v23, %v570_v24 }
 0x19b   : > { %2057 = vmatmul.mubr.msk.f32.vlgmr.msra.gmra.mxu1 %vm550_vm0, %v575_v25 }
 0x19c   : > { %2060 = vmatpush3.msra.mxu1 %v663_v26  ;;  %2067 = vmatprep.mubr.msk.f32.mxu1 %vm2508_vm1, %v2507_v8 }
 0x19d   : > { %2061 = vmatprep.subr.mxu1 %v2507_v8 }
 0x19e   : > { %2062 = vmatpush3.msra.mxu1 %v662_v27 }
 0x19f   : > { %2063 = vmatprep.subr.mxu1 %v2507_v8 }
 0x1a0   : > { %2064 = vmatpush3.msra.mxu1 %v661_v28 }
 0x1a1   : > { %2065 = vmatprep.subr.mxu1 %v2507_v8 }
 0x1a2   : > { %2066 = vmatpush3.msra.mxu1 %v660_v29 }
 0x1a3   : > { %2068 = vmatmul.mubr.msk.f32.vlgmr.msra.gmra.mxu1 %vm550_vm0, %v575_v25  ;;  %2070 = vmatprep.subr.mxu1 %v2507_v8 }
 0x1a4   : > { %2071 = vmatpush3.msra.mxu1 %v744_v30  ;;  %2078 = vmatprep.mubr.msk.f32.mxu1 %vm2508_vm1, %v2507_v8 }
 0x1a5   : > { %2072 = vmatprep.subr.mxu1 %v2507_v8 }
 0x1a6   : > { %2073 = vmatpush3.msra.mxu1 %v743_v31 }
 0x1a7   : > { %2074 = vmatprep.subr.mxu1 %v2507_v8 }
 0x1a8   : > { %2075 = vmatpush3.msra.mxu1 %v742_v32 }
 0x1a9   : > { %2076 = vmatprep.subr.mxu1 %v2507_v8 }
 0x1aa   : > { %2077 = vmatpush3.msra.mxu1 %v741_v33 }
 0x1ab   : > { %2079 = vmatmul.mubr.msk.f32.vlgmr.msra.gmra.mxu1 %vm550_vm0, %v575_v25  ;;  %2081 = vmatprep.subr.mxu1 %v2507_v8 }
 0x1ac   : > { %2083 = vmatprep.mubr.msk.f32.mxu1 %vm2508_vm1, %v2507_v8 }
 0x25b   : > { %v656_v35 = vpop.f32.mrf.mxu1 }
 0x25c   : > { %v657_v36 = vadd.f32 %v1960_v34, %v656_v35 }
 0x25d   : > { %v2058_v37 = vpop.f32.mrf.mxu1 }
 0x25e   : > { %984 = vrot.lane.b32.xlu1 %v657_v36, %s2509_s24 }
 0x263   : > { %v737_v39 = vpop.f32.mrf.mxu1 }
 0x264   : > { %v738_v40 = vadd.f32 %v1962_v38, %v737_v39 }
 0x265   : > { %v2069_v41 = vpop.f32.mrf.mxu1 }
 0x266   : > { %1153 = vrot.lane.b32.xlu0 %v738_v40, %s2510_s27  ;;  %986 = vrot.lane.b32.xlu1 %v738_v40, %s2509_s24 }
 0x267   : > { %2082 = vmatpush3.xpose.msk.msra.mxu1 %vm822_vm2, %v738_v40 }
 0x268   : > { %2086 = vmatprep.subr.mxu1 %v2507_v8 }
 0x26a   : > { %2084 = vmatmul.mubr.msk.f32.vlgmr.msra.gmra.mxu1 %vm822_vm2, %v657_v36  ;;  %1151 = vrot.lane.b32.xlu1 %v657_v36, %s2510_s27 }
 0x26b   : > { %v818_v43 = vpop.f32.mrf.mxu1  ;;  %2088 = vmatprep.mubr.msk.f32.mxu1 %vm2508_vm1, %v2507_v8 }
 0x26c   : > { %v2820_v44 = vadd.f32 %v1964_v42, %v818_v43 }
 0x26d   : > { %v2080_v45 = vpop.f32.mrf.mxu1 }
 0x26e   : > { %1319 = vrot.lane.b32.xlu1 %v738_v40, %s2511_s7  ;;  %2087 = vmatpush3.msra.mxu1 %v2820_v44  ;;  %v1503_v45 = vld [vmem:[%s3026_s8 + $0x18] sm:$0xff] }
 0x26f   : > { %2096 = vmatprep.subr.mxu1 %v2507_v8 }
 0x272   : > { %1317 = vrot.lane.b32.xlu1 %v657_v36, %s2511_s7 }
 0x2d0   : > { %v985_v46 = vpop.permute.xlu1 %984 }
 0x2d8   : > { %v987_v47 = vpop.permute.xlu1 %986  ;;  %v1154_v48 = vpop.permute.xlu0 %1153 }
 0x2d9   : > { %2092 = vmatpush3.xpose.msk.msra.mxu0 %vm822_vm2, %v987_v47  ;;  %v1501_v47 = vld [vmem:[%s3026_s8 + $0x8] sm:$0xff] }
 0x2da   : > { %2101 = vmatprep.subr.mxu0 %v2507_v8 }
 0x2dc   : > { %2094 = vmatmul.mubr.msk.f32.vlgmr.msra.gmra.mxu0 %vm822_vm2, %v985_v46  ;;  %v1152_v49 = vpop.permute.xlu1 %1151  ;;  %v1502_v46 = vld [vmem:[%s3026_s8 + $0x10] sm:$0xff] }
 0x2dd   : > { %2102 = vmatpush3.xpose.msk.msra.mxu0 %vm822_vm2, %v1154_v48  ;;  %2103 = vmatprep.mubr.msk.f32.mxu0 %vm2508_vm1, %v2507_v8 }
 0x2de   : > { %2111 = vmatprep.subr.mxu0 %v2507_v8 }
 0x2e0   : > { %2104 = vmatmul.mubr.msk.f32.vlgmr.msra.gmra.mxu0 %vm822_vm2, %v1152_v49  ;;  %v1320_v50 = vpop.permute.xlu1 %1319 }
 0x2e1   : > { %2112 = vmatpush3.xpose.msk.msra.mxu0 %vm822_vm2, %v1320_v50  ;;  %2113 = vmatprep.mubr.msk.f32.mxu0 %vm2508_vm1, %v2507_v8 }
 0x2e2   : > { %2121 = vmatprep.subr.mxu0 %v2507_v8 }
 0x2e4   : > { %v1318_v51 = vpop.permute.xlu1 %1317 }
 0x2e5   : > { %2114 = vmatmul.mubr.msk.f32.vlgmr.msra.gmra.mxu0 %vm822_vm2, %v1318_v51 }
 0x2e6   : > { %2129 = vmatprep.mubr.msk.f32.mxu0 %vm2508_vm1, %v2507_v8  ;;  %2122 = vmatpush3.msra.mxu0 %v1503_v45 }
 0x2e7   : > { %2123 = vmatprep.subr.mxu0 %v2507_v8 }
 0x2e8   : > { %2124 = vmatpush3.msra.mxu0 %v1502_v46 }
 0x2e9   : > { %2125 = vmatprep.subr.mxu0 %v2507_v8 }
 0x2ea   : > { %2126 = vmatpush3.msra.mxu0 %v1501_v47 }
 0x2eb   : > { %2127 = vmatprep.subr.mxu0 %v2507_v8 }
 0x32a   : > { %v895_v52 = vpop.f32.mrf.mxu1 }
 0x32b   : > { %v899_v53 = vmul.f32 0.35355338, %v895_v52  ;;  %v1500_v52 = vld [vmem:[%s3026_s8] sm:$0xff] }
 0x32c   : > { %v2085_v54 = vpop.f32.mrf.mxu1  ;;  %2128 = vmatpush3.msra.mxu0 %v1500_v52 }
 0x32d   : > { %v900_v55 = vsel %vm822_vm2, %v899_v53, -inf  ;;  %2143 = vmatprep.subr.mxu0 %v2507_v8 }
 0x32e   : > { %901 = vmax.xlane.f32.xlu1 %v900_v55 }
 0x39c   : > { %v1058_v56 = vpop.f32.mrf.mxu0 }
 0x39d   : > { %v1062_v57 = vmul.f32 0.35355338, %v1058_v56 }
 0x39e   : > { %v2095_v58 = vpop.f32.mrf.mxu0 }
 0x39f   : > { %v1063_v59 = vsel %vm822_vm2, %v1062_v57, -inf }
 0x3a0   : > { %1064 = vmax.xlane.f32.xlu0 %v1063_v59  ;;  %v1225_v60 = vpop.f32.mrf.mxu0 }
 0x3a1   : > { %v1229_v61 = vmul.f32 0.35355338, %v1225_v60 }
 0x3a2   : > { %v2105_v62 = vpop.f32.mrf.mxu0 }
 0x3a3   : > { %v1230_v63 = vsel %vm822_vm2, %v1229_v61, -inf  ;;  %v1980_v62 = vld [vmem:[%s2758_s26 + $0x2] ss:$0 sm:$0xff] }
 0x3a4   : > { %1231 = vmax.xlane.f32.xlu1 %v1230_v63 }
 0x3a5   : > { %v1391_v1 = vpop.f32.mrf.mxu0 }
 0x3a6   : > { %v1395_v2 = vmul.f32 0.35355338, %v1391_v1 }
 0x3a7   : > { %v2115_v3 = vpop.f32.mrf.mxu0 }
 0x3a8   : > { %v1396_v4 = vsel %vm822_vm2, %v1395_v2, -inf }
 0x3a9   : > { %1397 = vmax.xlane.f32.xlu1 %v1396_v4 }
 0x3b7   : > { %v902_v5 = vpop.xlane.xlu1 %901 }
 0x3b8   : > { %v903_v6 = vsub.f32 %v899_v53, %v902_v5 }
 0x3ba   : > { %v904_v7 = vmul.f32 1.442695, %v903_v6 }
 0x3bc   : > { %2278 = vpow2.f32 %v904_v7 }
 0x3c9   : > { %v2279_v9 = vpop.eup %2278 }
 0x3ca   : > { %v906_v10 = vsel %vm822_vm2, %v2279_v9, 0.0 }
 0x3cb   : > { %907 = vadd.xlane.f32.xlu0 %v906_v10 }
 0x429   : > { %v1065_v11 = vpop.xlane.xlu0 %1064 }
 0x42a   : > { %v1066_v12 = vsub.f32 %v1062_v57, %v1065_v11 }
 0x42c   : > { %v1067_v13 = vmul.f32 1.442695, %v1066_v12  ;;  %v1617_v12 = vld [vmem:[%s3028_s10 + $0x18] sm:$0xff] }
 0x42d   : > { %v1232_v14 = vpop.xlane.xlu1 %1231 }
 0x42e   : > { %2280 = vpow2.f32 %v1067_v13  ;;  %v1233_v15 = vsub.f32 %v1229_v61, %v1232_v14  ;;  %v1978_v61 = vld [vmem:[#allocation7] ss:$0 sm:$0xff]  ;;  %v1615_v13 = vld [vmem:[%s3028_s10 + $0x8] sm:$0xff] }
 0x42f   : > { %v1614_v14 = vld [vmem:[%s3028_s10] sm:$0xff] }
 0x430   : > { %v1234_v17 = vmul.f32 1.442695, %v1233_v15 }
 0x432   : > { %2282 = vpow2.f32 %v1234_v17  ;;  %v1398_v24 = vpop.xlane.xlu1 %1397 }
 0x433   : > { %v1399_v25 = vsub.f32 %v1395_v2, %v1398_v24 }
 0x435   : > { %v1400_v26 = vmul.f32 1.442695, %v1399_v25  ;;  %v1981_v25 = vld [vmem:[%s2758_s26 + $0x3] ss:$0 sm:$0xff] }
 0x43b   : > { %v2281_v18 = vpop.eup %2280 }
 0x43c   : > { %v1069_v20 = vsel %vm822_vm2, %v2281_v18, 0.0 }
 0x43d   : > { %1070 = vadd.xlane.f32.xlu1 %v1069_v20  ;;  %v548_v20 = vld [vmem:[%s2758_s26 + $0x4] sm:$0x1] }
 0x43f   : > { %v2283_v21 = vpop.eup %2282 }
 0x440   : > { %v1236_v22 = vsel %vm822_vm2, %v2283_v21, 0.0 }
 0x441   : > { %1237 = vadd.xlane.f32.xlu0 %v1236_v22 }
 0x44e   : > { %1241 = vrot.lane.b32.xlu1 %v2820_v44, %s2510_s27  ;;  %s2514_s27 = smov 24  }
 0x454   : > { %v908_v23 = vpop.xlane.xlu0 %907 }
 0x455   : > { %2284 = vrcp.f32 %v908_v23 }
 0x456   : > { %2286 = vpow2.f32 %v1400_v26 }
 0x457   : > { %1075 = vrot.lane.b32.xlu0 %v2820_v44, %s2509_s24 }
 0x462   : > { %v2285_v27 = vpop.eup %2284 }
 0x463   : > { %v910_v28 = vmul.f32 %v2285_v27, %v2279_v9  ;;  %v2287_v29 = vpop.eup %2286 }
 0x464   : > { %v1402_v30 = vsel %vm822_vm2, %v2287_v29, 0.0 }
 0x465   : > { %2089 = vmatmul.mubr.msk.f32.vlgmr.msra.gmra.mxu1 %vm822_vm2, %v910_v28  ;;  %v1722_v28 = vld [vmem:[%s3030_s12 + $0x78] sm:$0xff] }
 0x466   : > { %2098 = vmatprep.mubr.msk.f32.mxu1 %vm2508_vm1, %v2507_v8 }
 0x472   : > { %1403 = vadd.xlane.f32.xlu1 %v1402_v30  ;;  %v1718_v30 = vld [vmem:[%s3030_s12 + $0x58] sm:$0xff] }
 0x483   : > { %1407 = vrot.lane.b32.xlu1 %v2820_v44, %s2511_s7  ;;  %s1808_s7 = scalar_lea.sflag [#allocation4], %s532_s15 }
 0x4c6   : > { %v1071_v31 = vpop.xlane.xlu1 %1070 }
 0x4c7   : > { %2288 = vrcp.f32 %v1071_v31  ;;  %v1717_v31 = vld [vmem:[%s3030_s12 + $0x50] sm:$0xff] }
 0x4ca   : > { %v1238_v32 = vpop.xlane.xlu0 %1237  ;;  %v1242_v36 = vpop.permute.xlu1 %1241 }
 0x4cb   : > { %2290 = vrcp.f32 %v1238_v32  ;;  %v1716_v32 = vld [vmem:[%s3030_s12 + $0x48] sm:$0xff] }
 0x4ce   : > { %v1076_v33 = vpop.permute.xlu0 %1075 }
 0x4cf   : > { %2097 = vmatpush3.msra.mxu1 %v1076_v33  ;;  %v1715_v33 = vld [vmem:[%s3030_s12 + $0x40] sm:$0xff] }
 0x4d0   : > { %2106 = vmatprep.subr.mxu1 %v2507_v8 }
 0x4d4   : > { %v2289_v34 = vpop.eup %2288 }
 0x4d5   : > { %v1073_v35 = vmul.f32 %v2289_v34, %v2281_v18  ;;  %v1714_v34 = vld [vmem:[%s3030_s12 + $0x38] sm:$0xff] }
 0x4d7   : > { %2099 = vmatmul.mubr.msk.f32.vlgmr.msra.gmra.mxu1 %vm822_vm2, %v1073_v35  ;;  %v1713_v35 = vld [vmem:[%s3030_s12 + $0x30] sm:$0xff] }
 0x4d8   : > { %v2291_v37 = vpop.eup %2290  ;;  %2107 = vmatpush3.msra.mxu1 %v1242_v36  ;;  %2108 = vmatprep.mubr.msk.f32.mxu1 %vm2508_vm1, %v2507_v8  ;;  %v1712_v36 = vld [vmem:[%s3030_s12 + $0x28] sm:$0xff] }
 0x4d9   : > { %v1240_v38 = vmul.f32 %v2291_v37, %v2283_v21  ;;  %2116 = vmatprep.subr.mxu1 %v2507_v8  ;;  %v1603_v21 = vadd.f32 1.0, %v548_v20  ;;  %v1711_v37 = vld [vmem:[%s3030_s12 + $0x20] sm:$0xff] }
 0x4db   : > { %2109 = vmatmul.mubr.msk.f32.vlgmr.msra.gmra.mxu1 %vm822_vm2, %v1240_v38  ;;  %v1607_v22 = vrot.slane %v1603_v21, %v568_v19  ;;  %v1719_v19 = vld [vmem:[%s3030_s12 + $0x60] sm:$0xff]  ;;  %v1710_v38 = vld [vmem:[%s3030_s12 + $0x18] sm:$0xff] }
 0x4dc   : > { %2118 = vmatprep.mubr.msk.f32.mxu1 %vm2508_vm1, %v2507_v8 }
 0x4fb   : > { %v1404_v39 = vpop.xlane.xlu1 %1403 }
 0x4fc   : > { %2292 = vrcp.f32 %v1404_v39  ;;  %v1709_v39 = vld [vmem:[%s3030_s12 + $0x10] sm:$0xff] }
 0x4ff   : > { %v1408_v40 = vpop.permute.xlu1 %1407 }
 0x500   : > { %2117 = vmatpush3.msra.mxu1 %v1408_v40  ;;  %v1708_v40 = vld [vmem:[%s3030_s12 + $0x8] sm:$0xff] }
 0x501   : > { %2132 = vmatprep.subr.mxu1 %v2507_v8 }
 0x509   : > { %v2293_v41 = vpop.eup %2292 }
 0x50a   : > { %v1406_v42 = vmul.f32 %v2293_v41, %v2287_v29  ;;  %v1721_v29 = vld [vmem:[%s3030_s12 + $0x70] sm:$0xff]  ;;  %v1707_v41 = vld [vmem:[%s3030_s12] sm:$0xff] }
 0x50c   : > { %2119 = vmatmul.mubr.msk.f32.vlgmr.msra.gmra.mxu1 %vm822_vm2, %v1406_v42  ;;  %v1982_v42 = vld [vmem:[#allocation8] ss:$0 sm:$0xff] }
 0x50d   : > { %2140 = vmatprep.mubr.msk.f32.mxu1 %vm2508_vm1, %v2507_v8  ;;  %2133 = vmatpush3.msra.mxu1 %v1617_v12 }
 0x50e   : > { %2134 = vmatprep.subr.mxu1 %v2507_v8 }
 0x525   : > { %v980_v43 = vpop.f32.mrf.mxu1 }
 0x527   : > { %v2090_v44 = vpop.f32.mrf.mxu1 }
 0x597   : > { %v1147_v48 = vpop.f32.mrf.mxu1 }
 0x598   : > { %1484 = vrot.lane.b32.xlu0 %v1147_v48, %s2512_s19  ;;  %s534_s19 = scalar_lea.vmem [#allocation11], %s1956_s28 }
 0x599   : > { %v2100_v49 = vpop.f32.mrf.mxu1 }
 0x59b   : > { %v1313_v50 = vpop.f32.mrf.mxu1 }
 0x59c   : > { %1488 = vrot.lane.b32.xlu1 %v1313_v50, %s2513_s29  ;;  %s1821_s29 = sshll.u32 %s534_s19, 4  ;;  %s1822_s29 = int_to_ptr.vmem [resolvable:$true] %s1821_s29 }
 0x59d   : > { %v2110_v51 = vpop.f32.mrf.mxu1  ;;  %s2428_s18 = scalar_lea.vmem %s1822_s29, 128 }
 0x59e   : > { %p2429_p5 = scmp.ne.s32.totalorder %s1822_s29, %s2428_s18 }
 0x5a0   : > { %p2430_p10 = pnand %p2429_p5, %p3060_p6 }
 0x5a2   : > { %p2431_p4 = pneg %p2430_p10 }
 0x5cc   : > { %v1479_v53 = vpop.f32.mrf.mxu1 }
 0x5cd   : > { %1492 = vrot.lane.b32.xlu0 %v1479_v53, %s2514_s27  ;;  %s1819_s27 = scalar_lea.hbm %s3032_s14, %s1987_s25 }
 0x5ce   : > { %v2120_v54 = vpop.f32.mrf.mxu1 }
 0x60a   : > { %v1485_v55 = vpop.permute.xlu0 %1484 }
 0x60b   : > { %v1495_v57 = vsel %vm822_vm2, %v980_v43, %v1485_v55  ;;  %v1985_v55 = vld [vmem:[%s2758_s26 + $0x5] ss:$0 sm:$0xff]  ;;  %s2515_s26 = smov [#allocation11]  }
 0x60c   : > { %s2432_s17 = sshll.u32 %s2515_s26, 4  ;;  %s2433_s17 = int_to_ptr.vmem [resolvable:$false] %s2432_s17 }
 0x60d   : > { %s2434_s20 = scalar_lea.vmem %s2433_s17, 256  ;;  %p2435_p7 = scmp.lt.s32.totalorder %s1822_s29, %s2433_s17 }
 0x60e   : > { %v1489_v56 = vpop.permute.xlu1 %1488  ;;  %p2436_p8 = scmp.lt.s32.totalorder %s2434_s20, %s2428_s18 }
 0x60f   : > { %v1497_v58 = vsel %vm1496_vm3, %v1495_v57, %v1489_v56 }
 0x610   : > { %p2437_p11 = por %p2436_p8, %p2435_p7 }
 0x612   : > { %p2438_p0 = pnand %p2437_p11, %p2431_p4 }
 0x63f   : > { %v1493_v59 = vpop.permute.xlu0 %1492 }
 0x640   : > { %v1499_v60 = vsel %vm1498_vm4, %v1497_v58, %v1493_v59 }
 0x641   : > { %2130 = vmatmul.mubr.msk.f32.vlgmr.msra.gmra.mxu0 %vm550_vm0, %v1499_v60 }
 0x642   : > { %2175 = vmatprep.mubr.msk.f32.mxu0 %vm2508_vm1, %v2507_v8  ;;  %2144 = vmatpush3.msra.mxu0 %v1722_v28 }
 0x643   : > { %2145 = vmatprep.subr.mxu0 %v2507_v8 }
 0x644   : > { %2146 = vmatpush3.msra.mxu0 %v1721_v29 }
 0x645   : > { %2147 = vmatprep.subr.mxu0 %v2507_v8 }
 0x646   : > { %2148 = vmatpush3.msra.mxu0 %v1720_v16 }
 0x647   : > { %2149 = vmatprep.subr.mxu0 %v2507_v8 }
 0x648   : > { %2150 = vmatpush3.msra.mxu0 %v1719_v19 }
 0x649   : > { %2151 = vmatprep.subr.mxu0 %v2507_v8 }
 0x64a   : > { %2152 = vmatpush3.msra.mxu0 %v1718_v30 }
 0x64b   : > { %2153 = vmatprep.subr.mxu0 %v2507_v8 }
 0x64c   : > { %2154 = vmatpush3.msra.mxu0 %v1717_v31 }
 0x64d   : > { %2155 = vmatprep.subr.mxu0 %v2507_v8 }
 0x64e   : > { %2156 = vmatpush3.msra.mxu0 %v1716_v32 }
 0x64f   : > { %2157 = vmatprep.subr.mxu0 %v2507_v8 }
 0x650   : > { %2158 = vmatpush3.msra.mxu0 %v1715_v33 }
 0x651   : > { %2159 = vmatprep.subr.mxu0 %v2507_v8 }
 0x652   : > { %2160 = vmatpush3.msra.mxu0 %v1714_v34 }
 0x653   : > { %2161 = vmatprep.subr.mxu0 %v2507_v8 }
 0x654   : > { %2162 = vmatpush3.msra.mxu0 %v1713_v35 }
 0x655   : > { %2163 = vmatprep.subr.mxu0 %v2507_v8 }
 0x656   : > { %2164 = vmatpush3.msra.mxu0 %v1712_v36 }
 0x657   : > { %2165 = vmatprep.subr.mxu0 %v2507_v8 }
 0x658   : > { %2166 = vmatpush3.msra.mxu0 %v1711_v37 }
 0x659   : > { %2167 = vmatprep.subr.mxu0 %v2507_v8 }
 0x65a   : > { %2168 = vmatpush3.msra.mxu0 %v1710_v38 }
 0x65b   : > { %2169 = vmatprep.subr.mxu0 %v2507_v8 }
 0x65c   : > { %2170 = vmatpush3.msra.mxu0 %v1709_v39 }
 0x65d   : > { %2171 = vmatprep.subr.mxu0 %v2507_v8 }
 0x65e   : > { %2172 = vmatpush3.msra.mxu0 %v1708_v40 }
 0x65f   : > { %2173 = vmatprep.subr.mxu0 %v2507_v8 }
 0x660   : > { %2174 = vmatpush3.msra.mxu0 %v1707_v41 }
 0x701   : > { %v1580_v63 = vpop.f32.mrf.mxu0 }
 0x702   : > { %v1581_v1 = vadd.f32 %v1978_v61, %v1580_v63 }
 0x703   : > { %v2131_v2 = vpop.f32.mrf.mxu0 }
 0x704   : > { %v1588_v3 = vmul.f32 %v1980_v62, %v1581_v1 }
 0x706   : > { %v2892_v4 = vadd.f32 %v1588_v3, %v2725_v0  ;;  %v1616_v0 = vld [vmem:[%s3028_s10 + $0x10] sm:$0xff] }
 0x707   : > { %2135 = vmatpush3.msra.mxu1 %v1616_v0 }
 0x708   : > { %v1590_v5 = vsel %vm550_vm0, %v2892_v4, 0.0  ;;  %2136 = vmatprep.subr.mxu1 %v2507_v8 }
 0x709   : > { %1591 = vadd.xlane.f32.xlu1 %v1590_v5  ;;  %2137 = vmatpush3.msra.mxu1 %v1615_v13 }
 0x70a   : > { %2138 = vmatprep.subr.mxu1 %v2507_v8  ;;  %v1984_v8 = vld [vmem:[#allocation10] ss:$0 sm:$0xff] }
 0x70b   : > { %2139 = vmatpush3.msra.mxu1 %v1614_v14 }
 0x792   : > { %v1592_v6 = vpop.xlane.xlu1 %1591 }
 0x793   : > { %v1593_v7 = vmul.f32 0.03125, %v1592_v6 }
 0x795   : > { %v1594_v9 = vsub.f32 %v2892_v4, %v1593_v7 }
 0x797   : > { %v1595_v10 = vmul.f32 %v1594_v9, %v1594_v9 }
 0x799   : > { %v1596_v11 = vsel %vm550_vm0, %v1595_v10, 0.0 }
 0x79a   : > { %1597 = vadd.xlane.f32.xlu0 %v1596_v11 }
 0x823   : > { %v1598_v15 = vpop.xlane.xlu0 %1597 }
 0x824   : > { %v1599_v17 = vmul.f32 0.03125, %v1598_v15 }
 0x826   : > { %v1600_v18 = vadd.f32 1e-06, %v1599_v17 }
 0x828   : > { %2294 = vrsqrt.f32 %v1600_v18 }
 0x835   : > { %v2295_v23 = vpop.eup %2294 }
 0x836   : > { %v1602_v24 = vmul.f32 %v2295_v23, %v1594_v9 }
 0x838   : > { %v1608_v26 = vmul.f32 %v1607_v22, %v1602_v24 }
 0x83a   : > { %v1613_v27 = vadd.f32 %v1981_v25, %v1608_v26 }
 0x83c   : > { %2141 = vmatmul.mubr.msk.f32.vlgmr.msra.gmra.mxu1 %vm550_vm0, %v1613_v27 }
 0x8fc   : > { %v1694_v43 = vpop.f32.mrf.mxu1 }
 0x8fd   : > { %v1695_v44 = vadd.f32 %v1982_v42, %v1694_v43 }
 0x8fe   : > { %v2142_v45 = vpop.f32.mrf.mxu1 }
 0x8ff   : > { %v1698_v46 = vmul.f32 %v1695_v44, %v1695_v44 }
 0x901   : > { %v1699_v47 = vmul.f32 %v1698_v46, %v1695_v44 }
 0x903   : > { %v1700_v48 = vmul.f32 0.044715, %v1699_v47 }
 0x905   : > { %v1701_v49 = vadd.f32 %v1700_v48, %v1695_v44 }
 0x907   : > { %v1702_v50 = vmul.f32 0.7978846, %v1701_v49 }
 0x909   : > { %2296 = vtanh.f32 %v1702_v50 }
 0x916   : > { %v2297_v51 = vpop.eup %2296 }
 0x917   : > { %v1704_v52 = vadd.f32 1.0, %v2297_v51 }
 0x919   : > { %v1705_v53 = vmul.f32 0.5, %v1704_v52 }
 0x91b   : > { %v1706_v54 = vmul.f32 %v1705_v53, %v1695_v44 }
 0x91d   : > { %2176 = vmatmul.mubr.f32.vlgmr.msra.gmra.mxu0 %v1706_v54 }
 0x9dd   : > { %v1796_v56 = vpop.f32.mrf.mxu0 }
 0x9de   : > { %v1797_v57 = vadd.f32 %v1984_v8, %v1796_v56 }
 0x9df   : > { %v2177_v58 = vpop.f32.mrf.mxu0 }
 0x9e0   : > { %v1804_v59 = vmul.f32 %v1985_v55, %v1797_v57 }
 0x9e2   : > { %v1805_v60 = vadd.f32 %v1804_v59, %v2892_v4 }
 0x9e4   : > { %1806 = vst.msk [vmem:[%s534_s19] sm:$0xff] %vm550_vm0, %v1805_v60 }
 0x9e5   : > { %2441 = shalt.err (!%p2438_p0)
}
 0x9e6   : > { %s2442_s21 = scalar_lea.hbm %s1819_s27, 128  ;;  %s2446_s25 = scalar_lea.hbm %s3032_s14, 256 }
 0x9e7   : > { %p2443_p13 = scmp.ne.s32.totalorder %s1819_s27, %s2442_s21  ;;  %p2447_p9 = scmp.lt.s32.totalorder %s1819_s27, %s3032_s14 }
 0x9e8   : > { %p2448_p12 = scmp.lt.s32.totalorder %s2446_s25, %s2442_s21 }
 0x9e9   : > { %p2444_p1 = pnand %p2443_p13, %p3060_p6 }
 0x9ea   : > { %p2449_p3 = por %p2448_p12, %p2447_p9 }
 0x9eb   : > { %p2445_p2 = pneg %p2444_p1 }
 0x9ed   : > { %p2450_p5 = pnand %p2449_p3, %p2445_p2 }
 0x9ef   : > { %2453 = shalt.err (!%p2450_p5)
}
 0x9f0   : > { %2198 = dma.vmem_to_hbm [thread:$0]  (%p3060_p6), %s1822_s29, 128, %s1819_s27, %s1808_s7  }
 0x9f1 PF: > { %s3061_s24 = sld [smem:[#allocation16_spill]]  ;;  %p2230_p10 = scmp.ge.s32.totalorder %s2500_s16, 2 }
 0x9f2   : > { %s3062_s18 = sld [smem:[#allocation20_spill]] }
 0x9f7   : > { %s1833_s26 = sand.u32 1, %s3061_s24  }
 0x9f8   : > { %p3063_p4 = scmp.ne.s32.totalorder %s3062_s18, 0  ;;  %s1834_s17 = scalar_lea.sflag [#allocation4], %s1833_s26 }
 0x9fa   : > { %p2217_p7 = pnand %p2230_p10, %p3063_p4 }
 0x9fc   : > { %p2218_p8 = pneg %p2217_p7 }
 0x9fe   : > { %2483 = dma.done.wait (%p2218_p8), %s1834_s17, 128  }
 0x9ff   : > { %2485 = vsyncadd (%p2218_p8), %s1834_s17, 4294967168  ;;  %s3064_s16 = sld [smem:[#allocation18_spill]]  ;;  %s3067_s29 = smov %s2492_s30 }
 0xa00   : > { %s3065_s20 = sld [smem:[#allocation17_spill]] }
 0xa01   : > { %s3066_s15 = sld [smem:[#allocation19_spill]] }
 0xa05   : > { %p27_p11 = scmp.ge.s32.totalorder %s3064_s16, 4  }
 0xa06   : > { %s3068_s30 = smov %s3065_s20 }
 0xa07   :  { %29 = sbr.rel (!%p27_p11) target bundleno = 8 (0x8), region = 135 }
 0xa0c   :  { %1839 = vsyncpa [#allocation3], 1 }
 0xa0d   :  { %1841 = vsyncpa [#allocation3 + $0x1], 1 }
 0xa0e   :  { %1842 = vsyncpa [#allocation6], 1 }
 0xa0f   :  { %1843 = vsyncpa [#allocation9], 1 }
 0xa10   :  { %1844 = vsyncpa [#allocation4], 1 }
 0xa11   :  { %1846 = vsyncpa [#allocation4 + $0x1], 1 }

</bundles_post_ra>
